<compile_context>
chip_gen: v5e
topology: v5e:2x2
jax: 0.10.0
libtpu: 0.0.40
codegen_flags: <defaults>
</compile_context>

<pallas_src>
import functools

import jax
import jax.numpy as jnp
from jax.experimental import pallas as pl
from jax.experimental.pallas import tpu as pltpu


def _round_up(x, m):
    return (x + m - 1) // m * m


# ----------------------------------------------------------------------------
# Fused Pallas kernel
# ----------------------------------------------------------------------------
def _fused_deeplab_kernel(ah_ref, p_ref, wbb_ref, bbb_ref, wcls_ref, bcls_ref,
                          aw_ref, o_ref, wl_ref):
    """conv(3x3,s2)+ReLU -> 1x1 classifier -> separable bilinear upsample.

    grid = (N, JH): n = image ("parallel"), j = output-row block ("arbitrary").
    The backbone, classifier and W-interpolation run once per image (guarded by
    pl.when(j == 0)); their result lives in the `wl_ref` VMEM scratch which
    persists across the inner j steps.  Each j step only H-interpolates its
    block of TH output rows, giving real pipeline depth and a small output
    block.

    Per-step ref shapes:
      ah_ref   : (1, TH, Ho)    f32   H-interp rows of this output block
      p_ref    : (1, Mi, KP)    bf16  im2col patches of image n (Mi = Ho*Wo)
      wbb_ref  : (KP, HP)       bf16  backbone conv weights (padded)
      bbb_ref  : (1, HP)        f32   backbone bias (padded)
      wcls_ref : (HP, CP)       bf16  classifier weights (padded)
      bcls_ref : (1, CP)        f32   classifier bias (padded)
      aw_ref   : (W, Wo)        bf16  W-interp matrix
      o_ref    : (1, TH, W, CP) bf16  upsampled logits for TH output rows
      wl_ref   : (Ho, W, CP)    bf16  scratch: W-interpolated logits
    """
    j = pl.program_id(1)
    Ho, W, CP = wl_ref.shape
    TH = o_ref.shape[1]

    @pl.when(j == 0)
    def _():
        patches = p_ref[0]                                     # (Mi, KP) bf16
        # --- backbone: 3x3 s2 conv as one matmul + bias + ReLU (on-chip).
        feat = jnp.dot(patches, wbb_ref[...],
                       preferred_element_type=jnp.float32)     # (Mi, HP) f32
        feat = jnp.maximum(feat + bbb_ref[...], 0.0)
        # --- classifier: 1x1 conv as matmul + bias.
        logits = jnp.dot(feat.astype(jnp.bfloat16), wcls_ref[...],
                         preferred_element_type=jnp.float32)   # (Mi, CP) f32
        logits = logits + bcls_ref[...]
        # --- separable bilinear, stage 1: interpolate along W (bf16 MXU).
        logits3 = logits.reshape(Ho, -1, CP)                   # (Ho, Wo, CP)
        for ho in range(Ho):   # static unroll; Ho is small at feature res.
            row = jnp.dot(aw_ref[...], logits3[ho].astype(jnp.bfloat16),
                          preferred_element_type=jnp.float32)  # (W, CP)
            wl_ref[ho] = row.astype(jnp.bfloat16)

    # --- separable bilinear, stage 2: interpolate along H for this row block.
    ah = ah_ref[0]                                             # (TH, Ho) f32
    acc = jnp.zeros((TH, W, CP), jnp.float32)
    for ho in range(Ho):       # static unroll; cheap VPU MACs (XLU-free path)
        w_ho = ah[:, ho:ho + 1][:, :, None]                    # (TH, 1, 1)
        slab = wl_ref[ho].astype(jnp.float32)                  # (W, CP)
        acc = acc + w_ho * slab[None, :, :]
    o_ref[0] = acc.astype(o_ref.dtype)


# ----------------------------------------------------------------------------
# Glue: im2col, bilinear interpolation matrices, parameters
# ----------------------------------------------------------------------------
def im2col_3x3_s2(x_nhwc):
    """3x3 patches, stride 2, pad 1.  (N,H,W,C) -> (N,Ho,Wo,9*C)."""
    N, H, W, C = x_nhwc.shape
    Ho = (H + 2 - 3) // 2 + 1
    Wo = (W + 2 - 3) // 2 + 1
    xp = jnp.pad(x_nhwc, ((0, 0), (1, 1), (1, 1), (0, 0)))
    cols = []
    for dy in range(3):
        for dx in range(3):
            cols.append(xp[:, dy:dy + 2 * (Ho - 1) + 1:2,
                           dx:dx + 2 * (Wo - 1) + 1:2, :])
    return jnp.concatenate(cols, axis=-1), Ho, Wo


def bilinear_matrix(out_size, in_size):
    """Interpolation matrix matching F.interpolate(align_corners=False)."""
    scale = in_size / out_size
    dst = jnp.arange(out_size, dtype=jnp.float32)
    src = jnp.clip((dst + 0.5) * scale - 0.5, 0.0, float(in_size - 1))
    lo = jnp.floor(src).astype(jnp.int32)
    hi = jnp.minimum(lo + 1, in_size - 1)
    w_hi = src - lo.astype(jnp.float32)
    w_lo = 1.0 - w_hi
    rows = jnp.arange(out_size)
    mat = jnp.zeros((out_size, in_size), jnp.float32)
    mat = mat.at[rows, lo].add(w_lo)
    mat = mat.at[rows, hi].add(w_hi)
    return mat


def init_params(key, cin, hidden, num_classes):
    k1, k2, k3, k4 = jax.random.split(key, 4)
    w_bb = jax.random.normal(k1, (3, 3, cin, hidden), jnp.float32) * 0.1
    b_bb = jax.random.normal(k2, (hidden,), jnp.float32) * 0.1
    w_cls = jax.random.normal(k3, (hidden, num_classes), jnp.float32) * 0.1
    b_cls = jax.random.normal(k4, (num_classes,), jnp.float32) * 0.1
    return w_bb, b_bb, w_cls, b_cls


def prepare_params(params, cin, H, W, row_block=4):
    """One-time preprocessing, hoisted out of the forward path: pad + cast
    weights to bf16 and build the separable bilinear matrices."""
    w_bb, b_bb, w_cls, b_cls = params
    hidden = w_bb.shape[-1]
    num_classes = w_cls.shape[-1]
    Ho = (H + 2 - 3) // 2 + 1
    Wo = (W + 2 - 3) // 2 + 1
    K = 9 * cin
    KP = _round_up(K, 128)
    HP = _round_up(hidden, 128)
    CP = _round_up(num_classes, 128)

    wbb = jnp.pad(w_bb.reshape(K, hidden),
                  ((0, KP - K), (0, HP - hidden))).astype(jnp.bfloat16)
    bbb = jnp.pad(b_bb, (0, HP - hidden)).reshape(1, HP).astype(jnp.float32)
    wcls = jnp.pad(w_cls, ((0, HP - hidden),
                           (0, CP - num_classes))).astype(jnp.bfloat16)
    bcls = jnp.pad(b_cls, (0, CP - num_classes)).reshape(1, CP).astype(
        jnp.float32)

    TH = row_block if H % row_block == 0 else H     # output rows per grid step
    JH = H // TH
    ah_blocks = bilinear_matrix(H, Ho).reshape(JH, TH, Ho).astype(jnp.float32)
    aw = bilinear_matrix(W, Wo).astype(jnp.bfloat16)

    meta = dict(K=K, KP=KP, HP=HP, CP=CP, Ho=Ho, Wo=Wo, TH=TH, JH=JH,
                num_classes=num_classes)
    return (wbb, bbb, wcls, bcls, ah_blocks, aw), meta


# ----------------------------------------------------------------------------
# Forward pass
# ----------------------------------------------------------------------------
def deeplabv3_forward(x_nchw, prepared, meta):
    wbb, bbb, wcls, bcls, ah_blocks, aw = prepared
    N, C, H, W = x_nchw.shape
    K, KP, HP, CP = meta["K"], meta["KP"], meta["HP"], meta["CP"]
    Ho, Wo, TH, JH = meta["Ho"], meta["Wo"], meta["TH"], meta["JH"]
    num_classes = meta["num_classes"]
    Mi = Ho * Wo
    assert JH * TH == H and Mi == Ho * Wo

    # Per-call data prep: im2col + bf16 cast.
    # TODO(synk): fold the 9-tap gather into the kernel to avoid the ~9x
    # im2col expansion (and the K->128 zero pad) in HBM.
    x_nhwc = jnp.transpose(x_nchw, (0, 2, 3, 1)).astype(jnp.float32)
    patches, _, _ = im2col_3x3_s2(x_nhwc)                 # (N, Ho, Wo, 9*C)
    p = patches.reshape(N, Mi, K)
    p = jnp.pad(p, ((0, 0), (0, 0), (0, KP - K))).astype(jnp.bfloat16)

    flops = (2 * N * Mi * KP * HP            # backbone conv matmul
             + 2 * N * Mi * HP * CP          # classifier matmul
             + 2 * N * Ho * W * Wo * CP      # W-interp (separable stage 1)
             + 2 * N * H * W * Ho * CP)      # H-interp (separable stage 2)
    bytes_accessed = (p.size * 2 + wbb.size * 2 + wcls.size * 2
                      + bbb.size * 4 + bcls.size * 4
                      + ah_blocks.size * 4 + aw.size * 2
                      + N * H * W * CP * 2)  # bf16 output

    out = pl.pallas_call(
        _fused_deeplab_kernel,
        out_shape=jax.ShapeDtypeStruct((N, H, W, CP), jnp.bfloat16),
        grid_spec=pltpu.PrefetchScalarGridSpec(
            num_scalar_prefetch=0,
            grid=(N, JH),
            in_specs=[
                # Per-row-block H-interp rows.
                pl.BlockSpec((1, TH, Ho), lambda n, j: (j, 0, 0)),
                # Patches: block index depends only on n -> DMA'd once per
                # image even though it is consumed only at j == 0.
                pl.BlockSpec((1, Mi, KP), lambda n, j: (n, 0, 0)),
                # Grid-invariant operands (fetched once).
                # NOTE: could use pipeline_mode=pl.Buffered(1) to avoid
                # double-buffering them on v7x; left at default for portability.
                pl.BlockSpec((KP, HP), lambda n, j: (0, 0)),
                pl.BlockSpec((1, HP), lambda n, j: (0, 0)),
                pl.BlockSpec((HP, CP), lambda n, j: (0, 0)),
                pl.BlockSpec((1, CP), lambda n, j: (0, 0)),
                pl.BlockSpec((W, Wo), lambda n, j: (0, 0)),
            ],
            out_specs=pl.BlockSpec((1, TH, W, CP),
                                   lambda n, j: (n, j, 0, 0)),
            scratch_shapes=[pltpu.VMEM((Ho, W, CP), jnp.bfloat16)],
        ),
        compiler_params=pltpu.CompilerParams(
            dimension_semantics=("parallel", "arbitrary"),
            vmem_limit_bytes=32 * 1024 * 1024,   # fits v7x 64 MiB w/ headroom
        ),
        cost_estimate=pl.CostEstimate(
            flops=flops, transcendentals=0, bytes_accessed=bytes_accessed),
    )(ah_blocks, p, wbb, bbb, wcls, bcls, aw)

    # Slice off class padding, restore NCHW like PyTorch.
    out = out[..., :num_classes].astype(jnp.float32)      # (N, H, W, classes)
    return jnp.transpose(out, (0, 3, 1, 2))


def reference_forward(x_nchw, params):
    """Pure-JAX f32 reference (no Pallas) for correctness check."""
    w_bb, b_bb, w_cls, b_cls = params
    N, C, H, W = x_nchw.shape
    x_nhwc = jnp.transpose(x_nchw, (0, 2, 3, 1)).astype(jnp.float32)
    feat = jax.lax.conv_general_dilated(
        x_nhwc, w_bb, window_strides=(2, 2), padding=((1, 1), (1, 1)),
        dimension_numbers=("NHWC", "HWIO", "NHWC"))
    feat = jnp.maximum(feat + b_bb, 0.0)
    logits = jnp.einsum("nhwc,ck->nhwk", feat, w_cls) + b_cls
    ah = bilinear_matrix(H, feat.shape[1])
    aw = bilinear_matrix(W, feat.shape[2])
    up = jnp.einsum("oh,nhwk,pw->nopk", ah, logits, aw)    # (N, H, W, K)
    return jnp.transpose(up, (0, 3, 1, 2))


if __name__ == "__main__":
    key = jax.random.PRNGKey(0)
    kx, kp = jax.random.split(key)

    N, C, H, W = 2, 4, 16, 16
    HIDDEN, NUM_CLASSES = 32, 8

    x = jax.random.normal(kx, (N, C, H, W), jnp.float32)
    params = init_params(kp, C, HIDDEN, NUM_CLASSES)

    # One-time preprocessing (hoisted out of the forward path).
    prepared, meta = prepare_params(params, C, H, W, row_block=4)

    fwd = jax.jit(functools.partial(deeplabv3_forward, meta=meta))
    out = jax.block_until_ready(fwd(x, prepared))

    ref = reference_forward(x, params)
    assert out.shape == (N, NUM_CLASSES, H, W), out.shape
    max_err = float(jnp.max(jnp.abs(out - ref)))
    # bf16 MXU inputs / bf16 staging (f32 accumulation) -> loosened tolerance.
    assert max_err < 5e-2, f"mismatch vs reference: max abs err {max_err}"

    print("KERNEL_OK")
</pallas_src>

<mosaic_0001>
module attributes {stable_mosaic.version = 11 : i64} {
  func.func @_fused_deeplab_kernel(%arg0: i32, %arg1: i32, %arg2: memref<1x4x8xf32, #tpu.memory_space<vmem>>, %arg3: memref<1x64x128xbf16, #tpu.memory_space<vmem>>, %arg4: memref<128x128xbf16, #tpu.memory_space<vmem>>, %arg5: memref<1x128xf32, #tpu.memory_space<vmem>>, %arg6: memref<128x128xbf16, #tpu.memory_space<vmem>>, %arg7: memref<1x128xf32, #tpu.memory_space<vmem>>, %arg8: memref<16x8xbf16, #tpu.memory_space<vmem>>, %arg9: memref<1x4x16x128xbf16, #tpu.memory_space<vmem>>, %arg10: memref<8x16x128xbf16, #tpu.memory_space<vmem>>) attributes {dimension_semantics = [#tpu.dimension_semantics<parallel>, #tpu.dimension_semantics<arbitrary>], iteration_bounds = array<i64: 2, 4>, scalar_prefetch = 0 : i64, scratch_operands = 1 : i64, tpu.core_type = #tpu.core_type<tc>, window_params = [{transform_indices = @transform_0, window_bounds = array<i64: 1, 4, 8>}, {transform_indices = @transform_1, window_bounds = array<i64: 1, 64, 128>}, {pipeline_mode = #tpu.pipeline_mode<synchronous>, transform_indices = @transform_2, window_bounds = array<i64: 128, 128>}, {pipeline_mode = #tpu.pipeline_mode<synchronous>, transform_indices = @transform_3, window_bounds = array<i64: 1, 128>}, {pipeline_mode = #tpu.pipeline_mode<synchronous>, transform_indices = @transform_4, window_bounds = array<i64: 128, 128>}, {pipeline_mode = #tpu.pipeline_mode<synchronous>, transform_indices = @transform_5, window_bounds = array<i64: 1, 128>}, {pipeline_mode = #tpu.pipeline_mode<synchronous>, transform_indices = @transform_6, window_bounds = array<i64: 16, 8>}, {transform_indices = @transform_7, window_bounds = array<i64: 1, 4, 16, 128>}]} {
    %c0_i32 = arith.constant 0 : i32
    %0 = arith.cmpi eq, %arg1, %c0_i32 : i32
    %1 = arith.extui %0 : i1 to i32
    %c0_i32_0 = arith.constant 0 : i32
    %2 = arith.cmpi ne, %1, %c0_i32_0 : i32
    scf.if %2 {
      %c0_24 = arith.constant 0 : index
      %c0_25 = arith.constant 0 : index
      %c0_26 = arith.constant 0 : index
      %90 = vector.load %arg3[%c0_24, %c0_25, %c0_26] : memref<1x64x128xbf16, #tpu.memory_space<vmem>>, vector<1x64x128xbf16>
      %91 = vector.shape_cast %90 : vector<1x64x128xbf16> to vector<64x128xbf16>
      %c0_27 = arith.constant 0 : index
      %c0_28 = arith.constant 0 : index
      %92 = vector.load %arg4[%c0_27, %c0_28] : memref<128x128xbf16, #tpu.memory_space<vmem>>, vector<128x128xbf16>
      %cst_29 = arith.constant dense<0.000000e+00> : vector<64x128xf32>
      %93 = tpu.matmul %91, %92, %cst_29 {dimension_numbers = #tpu.dot_dimension_numbers<[1], [0], [0], [1], [0, 0, 1, 1], [], []>} : vector<64x128xbf16>, vector<128x128xbf16>, vector<64x128xf32> -> vector<64x128xf32>
      %c0_30 = arith.constant 0 : index
      %c0_31 = arith.constant 0 : index
      %94 = vector.load %arg5[%c0_30, %c0_31] : memref<1x128xf32, #tpu.memory_space<vmem>>, vector<1x128xf32>
      %95 = vector.broadcast %94 : vector<1x128xf32> to vector<64x128xf32>
      %96 = arith.addf %93, %95 : vector<64x128xf32>
      %cst_32 = arith.constant 0.000000e+00 : f32
      %97 = vector.broadcast %cst_32 : f32 to vector<64x128xf32>
      %98 = arith.maximumf %96, %97 : vector<64x128xf32>
      %99 = arith.truncf %98 : vector<64x128xf32> to vector<64x128xbf16>
      %c0_33 = arith.constant 0 : index
      %c0_34 = arith.constant 0 : index
      %100 = vector.load %arg6[%c0_33, %c0_34] : memref<128x128xbf16, #tpu.memory_space<vmem>>, vector<128x128xbf16>
      %cst_35 = arith.constant dense<0.000000e+00> : vector<64x128xf32>
      %101 = tpu.matmul %99, %100, %cst_35 {dimension_numbers = #tpu.dot_dimension_numbers<[1], [0], [0], [1], [0, 0, 1, 1], [], []>} : vector<64x128xbf16>, vector<128x128xbf16>, vector<64x128xf32> -> vector<64x128xf32>
      %c0_36 = arith.constant 0 : index
      %c0_37 = arith.constant 0 : index
      %102 = vector.load %arg7[%c0_36, %c0_37] : memref<1x128xf32, #tpu.memory_space<vmem>>, vector<1x128xf32>
      %103 = vector.broadcast %102 : vector<1x128xf32> to vector<64x128xf32>
      %104 = arith.addf %101, %103 : vector<64x128xf32>
      %105 = vector.shape_cast %104 : vector<64x128xf32> to vector<8x8x128xf32>
      %c0_38 = arith.constant 0 : index
      %c0_39 = arith.constant 0 : index
      %106 = vector.load %arg8[%c0_38, %c0_39] : memref<16x8xbf16, #tpu.memory_space<vmem>>, vector<16x8xbf16>
      %107 = vector.extract_strided_slice %105 {offsets = [0, 0, 0], sizes = [1, 8, 128], strides = [1, 1, 1]} : vector<8x8x128xf32> to vector<1x8x128xf32>
      %108 = vector.shape_cast %107 : vector<1x8x128xf32> to vector<8x128xf32>
      %109 = arith.truncf %108 : vector<8x128xf32> to vector<8x128xbf16>
      %cst_40 = arith.constant dense<0.000000e+00> : vector<16x128xf32>
      %110 = tpu.matmul %106, %109, %cst_40 {dimension_numbers = #tpu.dot_dimension_numbers<[1], [0], [0], [1], [0, 0, 1, 1], [], []>} : vector<16x8xbf16>, vector<8x128xbf16>, vector<16x128xf32> -> vector<16x128xf32>
      %111 = arith.truncf %110 : vector<16x128xf32> to vector<16x128xbf16>
      %c0_41 = arith.constant 0 : index
      %c0_42 = arith.constant 0 : index
      %c0_43 = arith.constant 0 : index
      %112 = vector.load %arg10[%c0_41, %c0_42, %c0_43] : memref<8x16x128xbf16, #tpu.memory_space<vmem>>, vector<1x16x128xbf16>
      %113 = vector.shape_cast %112 : vector<1x16x128xbf16> to vector<16x128xbf16>
      %114 = vector.shape_cast %111 : vector<16x128xbf16> to vector<1x16x128xbf16>
      tpu.vector_store %arg10[%c0_41, %c0_42, %c0_43], %114 {strides = array<i32>} : memref<8x16x128xbf16, #tpu.memory_space<vmem>>, vector<1x16x128xbf16>,
      %c0_44 = arith.constant 0 : index
      %c0_45 = arith.constant 0 : index
      %115 = vector.load %arg8[%c0_44, %c0_45] : memref<16x8xbf16, #tpu.memory_space<vmem>>, vector<16x8xbf16>
      %116 = vector.extract_strided_slice %105 {offsets = [1, 0, 0], sizes = [1, 8, 128], strides = [1, 1, 1]} : vector<8x8x128xf32> to vector<1x8x128xf32>
      %117 = vector.shape_cast %116 : vector<1x8x128xf32> to vector<8x128xf32>
      %118 = arith.truncf %117 : vector<8x128xf32> to vector<8x128xbf16>
      %cst_46 = arith.constant dense<0.000000e+00> : vector<16x128xf32>
      %119 = tpu.matmul %115, %118, %cst_46 {dimension_numbers = #tpu.dot_dimension_numbers<[1], [0], [0], [1], [0, 0, 1, 1], [], []>} : vector<16x8xbf16>, vector<8x128xbf16>, vector<16x128xf32> -> vector<16x128xf32>
      %120 = arith.truncf %119 : vector<16x128xf32> to vector<16x128xbf16>
      %c1_47 = arith.constant 1 : index
      %c0_48 = arith.constant 0 : index
      %c0_49 = arith.constant 0 : index
      %121 = vector.load %arg10[%c1_47, %c0_48, %c0_49] : memref<8x16x128xbf16, #tpu.memory_space<vmem>>, vector<1x16x128xbf16>
      %122 = vector.shape_cast %121 : vector<1x16x128xbf16> to vector<16x128xbf16>
      %123 = vector.shape_cast %120 : vector<16x128xbf16> to vector<1x16x128xbf16>
      tpu.vector_store %arg10[%c1_47, %c0_48, %c0_49], %123 {strides = array<i32>} : memref<8x16x128xbf16, #tpu.memory_space<vmem>>, vector<1x16x128xbf16>,
      %c0_50 = arith.constant 0 : index
      %c0_51 = arith.constant 0 : index
      %124 = vector.load %arg8[%c0_50, %c0_51] : memref<16x8xbf16, #tpu.memory_space<vmem>>, vector<16x8xbf16>
      %125 = vector.extract_strided_slice %105 {offsets = [2, 0, 0], sizes = [1, 8, 128], strides = [1, 1, 1]} : vector<8x8x128xf32> to vector<1x8x128xf32>
      %126 = vector.shape_cast %125 : vector<1x8x128xf32> to vector<8x128xf32>
      %127 = arith.truncf %126 : vector<8x128xf32> to vector<8x128xbf16>
      %cst_52 = arith.constant dense<0.000000e+00> : vector<16x128xf32>
      %128 = tpu.matmul %124, %127, %cst_52 {dimension_numbers = #tpu.dot_dimension_numbers<[1], [0], [0], [1], [0, 0, 1, 1], [], []>} : vector<16x8xbf16>, vector<8x128xbf16>, vector<16x128xf32> -> vector<16x128xf32>
      %129 = arith.truncf %128 : vector<16x128xf32> to vector<16x128xbf16>
      %c2_53 = arith.constant 2 : index
      %c0_54 = arith.constant 0 : index
      %c0_55 = arith.constant 0 : index
      %130 = vector.load %arg10[%c2_53, %c0_54, %c0_55] : memref<8x16x128xbf16, #tpu.memory_space<vmem>>, vector<1x16x128xbf16>
      %131 = vector.shape_cast %130 : vector<1x16x128xbf16> to vector<16x128xbf16>
      %132 = vector.shape_cast %129 : vector<16x128xbf16> to vector<1x16x128xbf16>
      tpu.vector_store %arg10[%c2_53, %c0_54, %c0_55], %132 {strides = array<i32>} : memref<8x16x128xbf16, #tpu.memory_space<vmem>>, vector<1x16x128xbf16>,
      %c0_56 = arith.constant 0 : index
      %c0_57 = arith.constant 0 : index
      %133 = vector.load %arg8[%c0_56, %c0_57] : memref<16x8xbf16, #tpu.memory_space<vmem>>, vector<16x8xbf16>
      %134 = vector.extract_strided_slice %105 {offsets = [3, 0, 0], sizes = [1, 8, 128], strides = [1, 1, 1]} : vector<8x8x128xf32> to vector<1x8x128xf32>
      %135 = vector.shape_cast %134 : vector<1x8x128xf32> to vector<8x128xf32>
      %136 = arith.truncf %135 : vector<8x128xf32> to vector<8x128xbf16>
      %cst_58 = arith.constant dense<0.000000e+00> : vector<16x128xf32>
      %137 = tpu.matmul %133, %136, %cst_58 {dimension_numbers = #tpu.dot_dimension_numbers<[1], [0], [0], [1], [0, 0, 1, 1], [], []>} : vector<16x8xbf16>, vector<8x128xbf16>, vector<16x128xf32> -> vector<16x128xf32>
      %138 = arith.truncf %137 : vector<16x128xf32> to vector<16x128xbf16>
      %c3_59 = arith.constant 3 : index
      %c0_60 = arith.constant 0 : index
      %c0_61 = arith.constant 0 : index
      %139 = vector.load %arg10[%c3_59, %c0_60, %c0_61] : memref<8x16x128xbf16, #tpu.memory_space<vmem>>, vector<1x16x128xbf16>
      %140 = vector.shape_cast %139 : vector<1x16x128xbf16> to vector<16x128xbf16>
      %141 = vector.shape_cast %138 : vector<16x128xbf16> to vector<1x16x128xbf16>
      tpu.vector_store %arg10[%c3_59, %c0_60, %c0_61], %141 {strides = array<i32>} : memref<8x16x128xbf16, #tpu.memory_space<vmem>>, vector<1x16x128xbf16>,
      %c0_62 = arith.constant 0 : index
      %c0_63 = arith.constant 0 : index
      %142 = vector.load %arg8[%c0_62, %c0_63] : memref<16x8xbf16, #tpu.memory_space<vmem>>, vector<16x8xbf16>
      %143 = vector.extract_strided_slice %105 {offsets = [4, 0, 0], sizes = [1, 8, 128], strides = [1, 1, 1]} : vector<8x8x128xf32> to vector<1x8x128xf32>
      %144 = vector.shape_cast %143 : vector<1x8x128xf32> to vector<8x128xf32>
      %145 = arith.truncf %144 : vector<8x128xf32> to vector<8x128xbf16>
      %cst_64 = arith.constant dense<0.000000e+00> : vector<16x128xf32>
      %146 = tpu.matmul %142, %145, %cst_64 {dimension_numbers = #tpu.dot_dimension_numbers<[1], [0], [0], [1], [0, 0, 1, 1], [], []>} : vector<16x8xbf16>, vector<8x128xbf16>, vector<16x128xf32> -> vector<16x128xf32>
      %147 = arith.truncf %146 : vector<16x128xf32> to vector<16x128xbf16>
      %c4_65 = arith.constant 4 : index
      %c0_66 = arith.constant 0 : index
      %c0_67 = arith.constant 0 : index
      %148 = vector.load %arg10[%c4_65, %c0_66, %c0_67] : memref<8x16x128xbf16, #tpu.memory_space<vmem>>, vector<1x16x128xbf16>
      %149 = vector.shape_cast %148 : vector<1x16x128xbf16> to vector<16x128xbf16>
      %150 = vector.shape_cast %147 : vector<16x128xbf16> to vector<1x16x128xbf16>
      tpu.vector_store %arg10[%c4_65, %c0_66, %c0_67], %150 {strides = array<i32>} : memref<8x16x128xbf16, #tpu.memory_space<vmem>>, vector<1x16x128xbf16>,
      %c0_68 = arith.constant 0 : index
      %c0_69 = arith.constant 0 : index
      %151 = vector.load %arg8[%c0_68, %c0_69] : memref<16x8xbf16, #tpu.memory_space<vmem>>, vector<16x8xbf16>
      %152 = vector.extract_strided_slice %105 {offsets = [5, 0, 0], sizes = [1, 8, 128], strides = [1, 1, 1]} : vector<8x8x128xf32> to vector<1x8x128xf32>
      %153 = vector.shape_cast %152 : vector<1x8x128xf32> to vector<8x128xf32>
      %154 = arith.truncf %153 : vector<8x128xf32> to vector<8x128xbf16>
      %cst_70 = arith.constant dense<0.000000e+00> : vector<16x128xf32>
      %155 = tpu.matmul %151, %154, %cst_70 {dimension_numbers = #tpu.dot_dimension_numbers<[1], [0], [0], [1], [0, 0, 1, 1], [], []>} : vector<16x8xbf16>, vector<8x128xbf16>, vector<16x128xf32> -> vector<16x128xf32>
      %156 = arith.truncf %155 : vector<16x128xf32> to vector<16x128xbf16>
      %c5_71 = arith.constant 5 : index
      %c0_72 = arith.constant 0 : index
      %c0_73 = arith.constant 0 : index
      %157 = vector.load %arg10[%c5_71, %c0_72, %c0_73] : memref<8x16x128xbf16, #tpu.memory_space<vmem>>, vector<1x16x128xbf16>
      %158 = vector.shape_cast %157 : vector<1x16x128xbf16> to vector<16x128xbf16>
      %159 = vector.shape_cast %156 : vector<16x128xbf16> to vector<1x16x128xbf16>
      tpu.vector_store %arg10[%c5_71, %c0_72, %c0_73], %159 {strides = array<i32>} : memref<8x16x128xbf16, #tpu.memory_space<vmem>>, vector<1x16x128xbf16>,
      %c0_74 = arith.constant 0 : index
      %c0_75 = arith.constant 0 : index
      %160 = vector.load %arg8[%c0_74, %c0_75] : memref<16x8xbf16, #tpu.memory_space<vmem>>, vector<16x8xbf16>
      %161 = vector.extract_strided_slice %105 {offsets = [6, 0, 0], sizes = [1, 8, 128], strides = [1, 1, 1]} : vector<8x8x128xf32> to vector<1x8x128xf32>
      %162 = vector.shape_cast %161 : vector<1x8x128xf32> to vector<8x128xf32>
      %163 = arith.truncf %162 : vector<8x128xf32> to vector<8x128xbf16>
      %cst_76 = arith.constant dense<0.000000e+00> : vector<16x128xf32>
      %164 = tpu.matmul %160, %163, %cst_76 {dimension_numbers = #tpu.dot_dimension_numbers<[1], [0], [0], [1], [0, 0, 1, 1], [], []>} : vector<16x8xbf16>, vector<8x128xbf16>, vector<16x128xf32> -> vector<16x128xf32>
      %165 = arith.truncf %164 : vector<16x128xf32> to vector<16x128xbf16>
      %c6_77 = arith.constant 6 : index
      %c0_78 = arith.constant 0 : index
      %c0_79 = arith.constant 0 : index
      %166 = vector.load %arg10[%c6_77, %c0_78, %c0_79] : memref<8x16x128xbf16, #tpu.memory_space<vmem>>, vector<1x16x128xbf16>
      %167 = vector.shape_cast %166 : vector<1x16x128xbf16> to vector<16x128xbf16>
      %168 = vector.shape_cast %165 : vector<16x128xbf16> to vector<1x16x128xbf16>
      tpu.vector_store %arg10[%c6_77, %c0_78, %c0_79], %168 {strides = array<i32>} : memref<8x16x128xbf16, #tpu.memory_space<vmem>>, vector<1x16x128xbf16>,
      %c0_80 = arith.constant 0 : index
      %c0_81 = arith.constant 0 : index
      %169 = vector.load %arg8[%c0_80, %c0_81] : memref<16x8xbf16, #tpu.memory_space<vmem>>, vector<16x8xbf16>
      %170 = vector.extract_strided_slice %105 {offsets = [7, 0, 0], sizes = [1, 8, 128], strides = [1, 1, 1]} : vector<8x8x128xf32> to vector<1x8x128xf32>
      %171 = vector.shape_cast %170 : vector<1x8x128xf32> to vector<8x128xf32>
      %172 = arith.truncf %171 : vector<8x128xf32> to vector<8x128xbf16>
      %cst_82 = arith.constant dense<0.000000e+00> : vector<16x128xf32>
      %173 = tpu.matmul %169, %172, %cst_82 {dimension_numbers = #tpu.dot_dimension_numbers<[1], [0], [0], [1], [0, 0, 1, 1], [], []>} : vector<16x8xbf16>, vector<8x128xbf16>, vector<16x128xf32> -> vector<16x128xf32>
      %174 = arith.truncf %173 : vector<16x128xf32> to vector<16x128xbf16>
      %c7_83 = arith.constant 7 : index
      %c0_84 = arith.constant 0 : index
      %c0_85 = arith.constant 0 : index
      %175 = vector.load %arg10[%c7_83, %c0_84, %c0_85] : memref<8x16x128xbf16, #tpu.memory_space<vmem>>, vector<1x16x128xbf16>
      %176 = vector.shape_cast %175 : vector<1x16x128xbf16> to vector<16x128xbf16>
      %177 = vector.shape_cast %174 : vector<16x128xbf16> to vector<1x16x128xbf16>
      tpu.vector_store %arg10[%c7_83, %c0_84, %c0_85], %177 {strides = array<i32>} : memref<8x16x128xbf16, #tpu.memory_space<vmem>>, vector<1x16x128xbf16>,
    } else {
    }
    %c0 = arith.constant 0 : index
    %c0_1 = arith.constant 0 : index
    %c0_2 = arith.constant 0 : index
    %3 = vector.load %arg2[%c0, %c0_1, %c0_2] : memref<1x4x8xf32, #tpu.memory_space<vmem>>, vector<1x4x8xf32>
    %4 = vector.shape_cast %3 : vector<1x4x8xf32> to vector<4x8xf32>
    %cst = arith.constant 0.000000e+00 : f32
    %5 = vector.broadcast %cst : f32 to vector<4x16x128xf32>
    %6 = vector.extract_strided_slice %4 {offsets = [0, 0], sizes = [4, 1], strides = [1, 1]} : vector<4x8xf32> to vector<4x1xf32>
    %7 = vector.shape_cast %6 : vector<4x1xf32> to vector<4x1x1xf32>
    %c0_3 = arith.constant 0 : index
    %c0_4 = arith.constant 0 : index
    %c0_5 = arith.constant 0 : index
    %8 = vector.load %arg10[%c0_3, %c0_4, %c0_5] : memref<8x16x128xbf16, #tpu.memory_space<vmem>>, vector<1x16x128xbf16>
    %9 = vector.shape_cast %8 : vector<1x16x128xbf16> to vector<16x128xbf16>
    %10 = arith.extf %9 : vector<16x128xbf16> to vector<16x128xf32>
    %11 = vector.shape_cast %10 : vector<16x128xf32> to vector<1x16x128xf32>
    %12 = vector.broadcast %7 : vector<4x1x1xf32> to vector<4x16x128xf32>
    %13 = vector.broadcast %11 : vector<1x16x128xf32> to vector<4x16x128xf32>
    %14 = arith.mulf %12, %13 : vector<4x16x128xf32>
    %15 = arith.addf %5, %14 : vector<4x16x128xf32>
    %16 = vector.extract_strided_slice %4 {offsets = [0, 1], sizes = [4, 1], strides = [1, 1]} : vector<4x8xf32> to vector<4x1xf32>
    %17 = vector.shape_cast %16 : vector<4x1xf32> to vector<4x1x1xf32>
    %c1 = arith.constant 1 : index
    %c0_6 = arith.constant 0 : index
    %c0_7 = arith.constant 0 : index
    %18 = vector.load %arg10[%c1, %c0_6, %c0_7] : memref<8x16x128xbf16, #tpu.memory_space<vmem>>, vector<1x16x128xbf16>
    %19 = vector.shape_cast %18 : vector<1x16x128xbf16> to vector<16x128xbf16>
    %20 = arith.extf %19 : vector<16x128xbf16> to vector<16x128xf32>
    %21 = vector.shape_cast %20 : vector<16x128xf32> to vector<1x16x128xf32>
    %22 = vector.broadcast %17 : vector<4x1x1xf32> to vector<4x16x128xf32>
    %23 = vector.broadcast %21 : vector<1x16x128xf32> to vector<4x16x128xf32>
    %24 = arith.mulf %22, %23 : vector<4x16x128xf32>
    %25 = arith.addf %15, %24 : vector<4x16x128xf32>
    %26 = vector.extract_strided_slice %4 {offsets = [0, 2], sizes = [4, 1], strides = [1, 1]} : vector<4x8xf32> to vector<4x1xf32>
    %27 = vector.shape_cast %26 : vector<4x1xf32> to vector<4x1x1xf32>
    %c2 = arith.constant 2 : index
    %c0_8 = arith.constant 0 : index
    %c0_9 = arith.constant 0 : index
    %28 = vector.load %arg10[%c2, %c0_8, %c0_9] : memref<8x16x128xbf16, #tpu.memory_space<vmem>>, vector<1x16x128xbf16>
    %29 = vector.shape_cast %28 : vector<1x16x128xbf16> to vector<16x128xbf16>
    %30 = arith.extf %29 : vector<16x128xbf16> to vector<16x128xf32>
    %31 = vector.shape_cast %30 : vector<16x128xf32> to vector<1x16x128xf32>
    %32 = vector.broadcast %27 : vector<4x1x1xf32> to vector<4x16x128xf32>
    %33 = vector.broadcast %31 : vector<1x16x128xf32> to vector<4x16x128xf32>
    %34 = arith.mulf %32, %33 : vector<4x16x128xf32>
    %35 = arith.addf %25, %34 : vector<4x16x128xf32>
    %36 = vector.extract_strided_slice %4 {offsets = [0, 3], sizes = [4, 1], strides = [1, 1]} : vector<4x8xf32> to vector<4x1xf32>
    %37 = vector.shape_cast %36 : vector<4x1xf32> to vector<4x1x1xf32>
    %c3 = arith.constant 3 : index
    %c0_10 = arith.constant 0 : index
    %c0_11 = arith.constant 0 : index
    %38 = vector.load %arg10[%c3, %c0_10, %c0_11] : memref<8x16x128xbf16, #tpu.memory_space<vmem>>, vector<1x16x128xbf16>
    %39 = vector.shape_cast %38 : vector<1x16x128xbf16> to vector<16x128xbf16>
    %40 = arith.extf %39 : vector<16x128xbf16> to vector<16x128xf32>
    %41 = vector.shape_cast %40 : vector<16x128xf32> to vector<1x16x128xf32>
    %42 = vector.broadcast %37 : vector<4x1x1xf32> to vector<4x16x128xf32>
    %43 = vector.broadcast %41 : vector<1x16x128xf32> to vector<4x16x128xf32>
    %44 = arith.mulf %42, %43 : vector<4x16x128xf32>
    %45 = arith.addf %35, %44 : vector<4x16x128xf32>
    %46 = vector.extract_strided_slice %4 {offsets = [0, 4], sizes = [4, 1], strides = [1, 1]} : vector<4x8xf32> to vector<4x1xf32>
    %47 = vector.shape_cast %46 : vector<4x1xf32> to vector<4x1x1xf32>
    %c4 = arith.constant 4 : index
    %c0_12 = arith.constant 0 : index
    %c0_13 = arith.constant 0 : index
    %48 = vector.load %arg10[%c4, %c0_12, %c0_13] : memref<8x16x128xbf16, #tpu.memory_space<vmem>>, vector<1x16x128xbf16>
    %49 = vector.shape_cast %48 : vector<1x16x128xbf16> to vector<16x128xbf16>
    %50 = arith.extf %49 : vector<16x128xbf16> to vector<16x128xf32>
    %51 = vector.shape_cast %50 : vector<16x128xf32> to vector<1x16x128xf32>
    %52 = vector.broadcast %47 : vector<4x1x1xf32> to vector<4x16x128xf32>
    %53 = vector.broadcast %51 : vector<1x16x128xf32> to vector<4x16x128xf32>
    %54 = arith.mulf %52, %53 : vector<4x16x128xf32>
    %55 = arith.addf %45, %54 : vector<4x16x128xf32>
    %56 = vector.extract_strided_slice %4 {offsets = [0, 5], sizes = [4, 1], strides = [1, 1]} : vector<4x8xf32> to vector<4x1xf32>
    %57 = vector.shape_cast %56 : vector<4x1xf32> to vector<4x1x1xf32>
    %c5 = arith.constant 5 : index
    %c0_14 = arith.constant 0 : index
    %c0_15 = arith.constant 0 : index
    %58 = vector.load %arg10[%c5, %c0_14, %c0_15] : memref<8x16x128xbf16, #tpu.memory_space<vmem>>, vector<1x16x128xbf16>
    %59 = vector.shape_cast %58 : vector<1x16x128xbf16> to vector<16x128xbf16>
    %60 = arith.extf %59 : vector<16x128xbf16> to vector<16x128xf32>
    %61 = vector.shape_cast %60 : vector<16x128xf32> to vector<1x16x128xf32>
    %62 = vector.broadcast %57 : vector<4x1x1xf32> to vector<4x16x128xf32>
    %63 = vector.broadcast %61 : vector<1x16x128xf32> to vector<4x16x128xf32>
    %64 = arith.mulf %62, %63 : vector<4x16x128xf32>
    %65 = arith.addf %55, %64 : vector<4x16x128xf32>
    %66 = vector.extract_strided_slice %4 {offsets = [0, 6], sizes = [4, 1], strides = [1, 1]} : vector<4x8xf32> to vector<4x1xf32>
    %67 = vector.shape_cast %66 : vector<4x1xf32> to vector<4x1x1xf32>
    %c6 = arith.constant 6 : index
    %c0_16 = arith.constant 0 : index
    %c0_17 = arith.constant 0 : index
    %68 = vector.load %arg10[%c6, %c0_16, %c0_17] : memref<8x16x128xbf16, #tpu.memory_space<vmem>>, vector<1x16x128xbf16>
    %69 = vector.shape_cast %68 : vector<1x16x128xbf16> to vector<16x128xbf16>
    %70 = arith.extf %69 : vector<16x128xbf16> to vector<16x128xf32>
    %71 = vector.shape_cast %70 : vector<16x128xf32> to vector<1x16x128xf32>
    %72 = vector.broadcast %67 : vector<4x1x1xf32> to vector<4x16x128xf32>
    %73 = vector.broadcast %71 : vector<1x16x128xf32> to vector<4x16x128xf32>
    %74 = arith.mulf %72, %73 : vector<4x16x128xf32>
    %75 = arith.addf %65, %74 : vector<4x16x128xf32>
    %76 = vector.extract_strided_slice %4 {offsets = [0, 7], sizes = [4, 1], strides = [1, 1]} : vector<4x8xf32> to vector<4x1xf32>
    %77 = vector.shape_cast %76 : vector<4x1xf32> to vector<4x1x1xf32>
    %c7 = arith.constant 7 : index
    %c0_18 = arith.constant 0 : index
    %c0_19 = arith.constant 0 : index
    %78 = vector.load %arg10[%c7, %c0_18, %c0_19] : memref<8x16x128xbf16, #tpu.memory_space<vmem>>, vector<1x16x128xbf16>
    %79 = vector.shape_cast %78 : vector<1x16x128xbf16> to vector<16x128xbf16>
    %80 = arith.extf %79 : vector<16x128xbf16> to vector<16x128xf32>
    %81 = vector.shape_cast %80 : vector<16x128xf32> to vector<1x16x128xf32>
    %82 = vector.broadcast %77 : vector<4x1x1xf32> to vector<4x16x128xf32>
    %83 = vector.broadcast %81 : vector<1x16x128xf32> to vector<4x16x128xf32>
    %84 = arith.mulf %82, %83 : vector<4x16x128xf32>
    %85 = arith.addf %75, %84 : vector<4x16x128xf32>
    %86 = arith.truncf %85 : vector<4x16x128xf32> to vector<4x16x128xbf16>
    %c0_20 = arith.constant 0 : index
    %c0_21 = arith.constant 0 : index
    %c0_22 = arith.constant 0 : index
    %c0_23 = arith.constant 0 : index
    %87 = vector.load %arg9[%c0_20, %c0_21, %c0_22, %c0_23] : memref<1x4x16x128xbf16, #tpu.memory_space<vmem>>, vector<1x4x16x128xbf16>
    %88 = vector.shape_cast %87 : vector<1x4x16x128xbf16> to vector<4x16x128xbf16>
    %89 = vector.shape_cast %86 : vector<4x16x128xbf16> to vector<1x4x16x128xbf16>
    tpu.vector_store %arg9[%c0_20, %c0_21, %c0_22, %c0_23], %89 {strides = array<i32>} : memref<1x4x16x128xbf16, #tpu.memory_space<vmem>>, vector<1x4x16x128xbf16>,
    return
  }
  func.func @transform_0(%arg0: i32, %arg1: i32) -> (i32, i32, i32) {
    %c0_i32 = arith.constant 0 : i32
    %c0_i32_0 = arith.constant 0 : i32
    %c0_i32_1 = arith.constant 0 : i32
    return %arg1, %c0_i32, %c0_i32_0 : i32, i32, i32
  }
  func.func @transform_1(%arg0: i32, %arg1: i32) -> (i32, i32, i32) {
    %c0_i32 = arith.constant 0 : i32
    %c0_i32_0 = arith.constant 0 : i32
    %c0_i32_1 = arith.constant 0 : i32
    return %arg0, %c0_i32, %c0_i32_0 : i32, i32, i32
  }
  func.func @transform_2(%arg0: i32, %arg1: i32) -> (i32, i32) {
    %c0_i32 = arith.constant 0 : i32
    %c0_i32_0 = arith.constant 0 : i32
    %c0_i32_1 = arith.constant 0 : i32
    return %c0_i32, %c0_i32_0 : i32, i32
  }
  func.func @transform_3(%arg0: i32, %arg1: i32) -> (i32, i32) {
    %c0_i32 = arith.constant 0 : i32
    %c0_i32_0 = arith.constant 0 : i32
    %c0_i32_1 = arith.constant 0 : i32
    return %c0_i32, %c0_i32_0 : i32, i32
  }
  func.func @transform_4(%arg0: i32, %arg1: i32) -> (i32, i32) {
    %c0_i32 = arith.constant 0 : i32
    %c0_i32_0 = arith.constant 0 : i32
    %c0_i32_1 = arith.constant 0 : i32
    return %c0_i32, %c0_i32_0 : i32, i32
  }
  func.func @transform_5(%arg0: i32, %arg1: i32) -> (i32, i32) {
    %c0_i32 = arith.constant 0 : i32
    %c0_i32_0 = arith.constant 0 : i32
    %c0_i32_1 = arith.constant 0 : i32
    return %c0_i32, %c0_i32_0 : i32, i32
  }
  func.func @transform_6(%arg0: i32, %arg1: i32) -> (i32, i32) {
    %c0_i32 = arith.constant 0 : i32
    %c0_i32_0 = arith.constant 0 : i32
    %c0_i32_1 = arith.constant 0 : i32
    return %c0_i32, %c0_i32_0 : i32, i32
  }
  func.func @transform_7(%arg0: i32, %arg1: i32) -> (i32, i32, i32, i32) {
    %c0_i32 = arith.constant 0 : i32
    %c0_i32_0 = arith.constant 0 : i32
    %c0_i32_1 = arith.constant 0 : i32
    return %arg0, %arg1, %c0_i32, %c0_i32_0 : i32, i32, i32, i32
  }
}

</mosaic_0001>

<bundles_post_ra>
// kernel: deeplabv3_forward.1
= control target key start
LH: loop header
LB: loop body
LE: loop exit
PB: predicated region body
PF: predicated region fallthrough
CT: control target
= control target key end

     0   :  { %s1670_s24 = smov 0   ;;  %s1672_s25 = smov 0   ;;  %s1987_s0 = inlined_call_operand.vmem [shape: f32[4,4,8], index: 0, kind: input, shape index: {}]   ;;  %s1988_s1 = inlined_call_operand.vmem [shape: bf16[2,64,128], index: 1, kind: input, shape index: {}]   ;;  %s1989_s2 = inlined_call_operand.vmem [shape: bf16[128,128], index: 2, kind: input, shape index: {}]   ;;  %s1990_s3 = inlined_call_operand.vmem [shape: f32[1,128], index: 3, kind: input, shape index: {}]   ;;  %s1991_s4 = inlined_call_operand.vmem [shape: bf16[128,128], index: 4, kind: input, shape index: {}]   ;;  %s1992_s5 = inlined_call_operand.vmem [shape: f32[1,128], index: 5, kind: input, shape index: {}]   ;;  %s1993_s6 = inlined_call_operand.vmem [shape: bf16[16,8], index: 6, kind: input, shape index: {}]   ;;  %s1994_s7 = inlined_call_operand.vmem [shape: bf16[2,16,16,128], index: 7, kind: output, shape index: {}]  }
   0x1   :  { %s1674_s26 = smov 0   ;;  %s1676_s27 = smov 0  }
   0x2   :  { %s1678_s28 = smov 0  }
   0x3 LB: > { %s26_s29 = sadd.s32 1, %s1612_s26  ;;  %s29_s30 = sadd.s32 1, %s1616_s27  ;;  %s1620_s28 = sphi %s1678_s28, %s17_s28   ;;  %s1616_s27 = sphi %s1676_s27, %s1998_s27   ;;  %s1612_s26 = sphi %s1674_s26, %s1997_s26   ;;  %s1608_s25 = sphi %s1672_s25, %s1996_s25   ;;  %s1604_s24 = sphi %s1670_s24, %s1995_s24  }
   0x4   : > { %p27_p0 = scmp.ge.s32.totalorder %s26_s29, 4  ;;  %p1255_p1 = scmp.ge.s32.totalorder %s1620_s28, 1 }
   0x5   : > { %p260_p2 = scmp.lt.s32.totalorder %s1620_s28, 9 }
   0x6   : > { %s2000_s29 = smov (%p27_p0, %s26_s29), 0  ;;  %s2002_s30 = smov (!%p27_p0, %s29_s30), %s1616_s27 }
   0x7   : > { %p261_p3 = pnand %p1255_p1, %p260_p2  ;;  %p31_p4 = scmp.ge.s32.totalorder %s2002_s30, 2 }
   0x8   : > { %p301_p5 = scmp.lt.s32.totalorder (!%p261_p3), %s1604_s24, 3  ;;  %p305_p6 = scmp.lt.s32.totalorder (!%p261_p3), %s1608_s25, 1 }
   0x9   : > { %s2004_s30 = smov (%p31_p4, %s2002_s30), 0  ;;  %264 = sbr.rel (%p261_p3) target bundleno = 750 (0x2ee), region = 48 }
   0xa   : > { %s1259_s8 = sshll.u32 (!%p261_p3), %s1604_s24, 2  ;;  %p1263_p8 = scmp.ne.s32.totalorder (!%p261_p3), %s1604_s24, 0 }
   0xb   : > { %p313_p7 = scmp.lt.s32.totalorder (!%p261_p3), %s1259_s8, 15 }
   0xe   : > { %s302_s9 = scalar_select %p301_p5, %s1604_s24, 3 }
   0xf   : > { %s2006_s25 = smov (!%p305_p6, %s1608_s25), 1  ;;  %s2008_s8 = smov (!%p313_p7, %s1259_s8), 15 }
  0x10   : > { %s1256_s10 = sshll.u32 %s302_s9, 2  ;;  %s1386_s14 = sshll.u32 %s2006_s25, 5 }
  0x11   : > { %s1708_s13 = scalar_lea.vmem %s1987_s0, %s1256_s10  ;;  %s1713_s17 = scalar_lea.vmem %s1988_s1, %s1386_s14 }
  0x12   : > { %s1260_s18 = sshll.u32 %s2008_s8, 1  ;;  %325 = sbr.rel (%p1263_p8) target bundleno = 528 (0x210), region = 52 }
  0x13   : > { %s317_s19 = sadd.s32 %s1386_s14, %s1260_s18 }
  0x14   : > { %s1262_s20 = sshll.u32 %s317_s19, 2 }
  0x15   : > { %s1718_s23 = scalar_lea.vmem %s1994_s7, %s1262_s20 }
  0x17   : > { %v1398_v0 = vld [vmem:[%s1989_s2 + $0x38] sm:$0xff]  ;;  %v1397_v1 = vld [vmem:[%s1989_s2 + $0x30] sm:$0xff]  ;;  %v1396_v2 = vld [vmem:[%s1989_s2 + $0x28] sm:$0xff]  ;;  %vm576_vm0 = vcmask 1043456   ;;  %vm572_vm1 = vcmask 64512  }
  0x18   : > { %426 = vmatpush.bf16.msra.mxu0 %v1398_v0  ;;  %v1395_v3 = vld [vmem:[%s1989_s2 + $0x20] sm:$0xff]  ;;  %v1394_v4 = vld [vmem:[%s1989_s2 + $0x18] sm:$0xff]  ;;  %v1393_v5 = vld [vmem:[%s1989_s2 + $0x10] sm:$0xff] }
  0x19   : > { %v1392_v6 = vld [vmem:[%s1989_s2 + $0x8] sm:$0xff]  ;;  %v1391_v7 = vld [vmem:[%s1989_s2] sm:$0xff]  ;;  %v1406_v10 = vld [vmem:[%s1991_s4 + $0x38] sm:$0xff] }
  0x1a   : > { %v1387_v8 = vld [vmem:[%s1713_s17] sm:$0xff]  ;;  %v1388_v9 = vld [vmem:[%s1713_s17 + $0x8] sm:$0xff]  ;;  %535 = vmatpush.bf16.msra.mxu1 %v1406_v10  ;;  %v1405_v11 = vld [vmem:[%s1991_s4 + $0x30] sm:$0xff] }
  0x1b   : > { %v1404_v12 = vld [vmem:[%s1991_s4 + $0x28] sm:$0xff]  ;;  %v1403_v13 = vld [vmem:[%s1991_s4 + $0x20] sm:$0xff]  ;;  %v1389_v14 = vld [vmem:[%s1713_s17 + $0x10] sm:$0xff] }
  0x1c   : > { %427 = vmatpush.bf16.msra.mxu0 %v1397_v1  ;;  %v1390_v15 = vld [vmem:[%s1713_s17 + $0x18] sm:$0xff]  ;;  %v1401_v17 = vld [vmem:[%s1991_s4 + $0x10] sm:$0xff]  ;;  %v1400_v18 = vld [vmem:[%s1991_s4 + $0x8] sm:$0xff] }
  0x1d   : > { %v1402_v16 = vld [vmem:[%s1991_s4 + $0x18] sm:$0xff]  ;;  %v1399_v19 = vld [vmem:[%s1991_s4] sm:$0xff] }
  0x1e   : > { %536 = vmatpush.bf16.msra.mxu1 %v1405_v11  ;;  %v1558_v21 = vld [vmem:[%s1990_s3] ss:$0 sm:$0xff] }
  0x1f   : > { %v1559_v49 = vld [vmem:[%s1992_s5] ss:$0 sm:$0xff] }
  0x20   : > { %428 = vmatpush.bf16.msra.mxu0 %v1396_v2  ;;  %v1407_v54 = vld [vmem:[%s1993_s6] sm:$0xff] }
  0x21   : > { %v1408_v59 = vld [vmem:[%s1993_s6] sm:$0xff] }
  0x22   : > { %537 = vmatpush.bf16.msra.mxu1 %v1404_v12  ;;  %v1409_v0 = vld [vmem:[%s1993_s6] sm:$0xff] }
  0x23   : > { %v1411_v10 = vld [vmem:[%s1993_s6] sm:$0xff] }
  0x24   : > { %429 = vmatpush.bf16.msra.mxu0 %v1395_v3 }
  0x26   : > { %538 = vmatpush.bf16.msra.mxu1 %v1403_v13 }
  0x28   : > { %430 = vmatpush.bf16.msra.mxu0 %v1394_v4 }
  0x2a   : > { %539 = vmatpush.bf16.msra.mxu1 %v1402_v16 }
  0x2c   : > { %431 = vmatpush.bf16.msra.mxu0 %v1393_v5  ;;  %v1410_v5 = vld [vmem:[%s1993_s6] sm:$0xff] }
  0x2e   : > { %540 = vmatpush.bf16.msra.mxu1 %v1401_v17 }
  0x30   : > { %432 = vmatpush.bf16.msra.mxu0 %v1392_v6 }
  0x32   : > { %541 = vmatpush.bf16.msra.mxu1 %v1400_v18 }
  0x34   : > { %433 = vmatpush.bf16.msra.mxu0 %v1391_v7 }
  0x36   : > { %542 = vmatpush.bf16.msra.mxu1 %v1399_v19 }
  0x37   : > { %434 = vmatmul.bf16.vlgmr.msra.gmra.mxu0 %v1387_v8 }
  0x47   : > { %439 = vmatmul.bf16.gmra.mxu0 %v1388_v9 }
  0x57   : > { %444 = vmatmul.bf16.gmra.mxu0 %v1389_v14 }
  0x67   : > { %449 = vmatmul.bf16.gmra.mxu0 %v1390_v15  ;;  %v1412_v15 = vld [vmem:[%s1993_s6] sm:$0xff] }
  0xb4   : > { %v435_v20 = vpop.f32.mrf.mxu0 }
  0xb5   : > { %v436_v22 = vadd.f32 %v1558_v21, %v435_v20  ;;  %v1413_v20 = vld [vmem:[%s1993_s6] sm:$0xff] }
  0xb7   : > { %v455_v25 = vmax.f32 %v436_v22, 0.0 }
  0xbc   : > { %v437_v23 = vpop.f32.mrf.mxu0 }
  0xbd   : > { %v438_v24 = vadd.f32 %v1558_v21, %v437_v23 }
  0xbf   : > { %v456_v26 = vmax.f32 %v438_v24, 0.0 }
  0xc1   : > { %v463_v27 = vpack.c.bf16 %v456_v26, %v455_v25  ;;  %v1414_v25 = vld [vmem:[%s1993_s6] sm:$0xff] }
  0xc3   : > { %543 = vmatmul.bf16.vlgmr.msra.gmra.mxu1 %v463_v27 }
  0xc4   : > { %v440_v28 = vpop.f32.mrf.mxu0 }
  0xc5   : > { %v441_v29 = vadd.f32 %v1558_v21, %v440_v28 }
  0xc7   : > { %v457_v32 = vmax.f32 %v441_v29, 0.0 }
  0xcc   : > { %v442_v30 = vpop.f32.mrf.mxu0 }
  0xcd   : > { %v443_v31 = vadd.f32 %v1558_v21, %v442_v30 }
  0xcf   : > { %v458_v33 = vmax.f32 %v443_v31, 0.0 }
  0xd1   : > { %v464_v34 = vpack.c.bf16 %v458_v33, %v457_v32 }
  0xd3   : > { %548 = vmatmul.bf16.gmra.mxu1 %v464_v34 }
  0xd4   : > { %v445_v35 = vpop.f32.mrf.mxu0 }
  0xd5   : > { %v446_v36 = vadd.f32 %v1558_v21, %v445_v35 }
  0xd7   : > { %v459_v39 = vmax.f32 %v446_v36, 0.0 }
  0xdc   : > { %v447_v37 = vpop.f32.mrf.mxu0 }
  0xdd   : > { %v448_v38 = vadd.f32 %v1558_v21, %v447_v37 }
  0xdf   : > { %v460_v40 = vmax.f32 %v448_v38, 0.0 }
  0xe1   : > { %v465_v41 = vpack.c.bf16 %v460_v40, %v459_v39 }
  0xe3   : > { %553 = vmatmul.bf16.gmra.mxu1 %v465_v41 }
  0xe4   : > { %v450_v42 = vpop.f32.mrf.mxu0 }
  0xe5   : > { %v451_v43 = vadd.f32 %v1558_v21, %v450_v42 }
  0xe7   : > { %v461_v46 = vmax.f32 %v451_v43, 0.0 }
  0xec   : > { %v452_v44 = vpop.f32.mrf.mxu0 }
  0xed   : > { %v453_v45 = vadd.f32 %v1558_v21, %v452_v44 }
  0xef   : > { %v462_v47 = vmax.f32 %v453_v45, 0.0 }
  0xf1   : > { %v466_v48 = vpack.c.bf16 %v462_v47, %v461_v46 }
  0xf3   : > { %558 = vmatmul.bf16.gmra.mxu1 %v466_v48 }
 0x140   : > { %v544_v50 = vpop.f32.mrf.mxu1 }
 0x141   : > { %v545_v51 = vadd.f32 %v1559_v49, %v544_v50 }
 0x143   : > { %v566_v52 = vpack.c.bf16 %v545_v51, %v545_v51 }
 0x145   : > { %v578_v53 = vsel %vm576_vm0, %v566_v52, 0 }
 0x146   : > { %587 = vmatpush.bf16.msra.mxu2 %v578_v53 }
 0x148   : > { %v546_v55 = vpop.f32.mrf.mxu1 }
 0x149   : > { %v547_v56 = vadd.f32 %v1559_v49, %v546_v55  ;;  %1348 = vmatmul.msk.bf16.vlgmr.msra.gmra.mxu2 %vm572_vm1, %v1407_v54 }
 0x14b   : > { %v600_v57 = vpack.c.bf16 %v547_v56, %v547_v56 }
 0x14d   : > { %v610_v58 = vsel %vm576_vm0, %v600_v57, 0 }
 0x14e   : > { %619 = vmatpush.bf16.msra.mxu3 %v610_v58 }
 0x150   : > { %v549_v60 = vpop.f32.mrf.mxu1 }
 0x151   : > { %v550_v61 = vadd.f32 %v1559_v49, %v549_v60  ;;  %1353 = vmatmul.msk.bf16.vlgmr.msra.gmra.mxu3 %vm572_vm1, %v1408_v59 }
 0x153   : > { %v633_v62 = vpack.c.bf16 %v550_v61, %v550_v61 }
 0x155   : > { %v643_v63 = vsel %vm576_vm0, %v633_v62, 0 }
 0x156   : > { %652 = vmatpush.bf16.msrb.mxu2 %v643_v63 }
 0x158   : > { %v551_v1 = vpop.f32.mrf.mxu1 }
 0x159   : > { %v552_v2 = vadd.f32 %v1559_v49, %v551_v1  ;;  %1358 = vmatmul.msk.bf16.vlgmr.msrb.gmra.mxu2 %vm572_vm1, %v1409_v0 }
 0x15b   : > { %v666_v3 = vpack.c.bf16 %v552_v2, %v552_v2 }
 0x15d   : > { %v676_v4 = vsel %vm576_vm0, %v666_v3, 0 }
 0x15e   : > { %685 = vmatpush.bf16.msrb.mxu3 %v676_v4 }
 0x160   : > { %v554_v6 = vpop.f32.mrf.mxu1 }
 0x161   : > { %v555_v7 = vadd.f32 %v1559_v49, %v554_v6  ;;  %1363 = vmatmul.msk.bf16.vlgmr.msrb.gmra.mxu3 %vm572_vm1, %v1410_v5 }
 0x163   : > { %v699_v8 = vpack.c.bf16 %v555_v7, %v555_v7 }
 0x165   : > { %v709_v9 = vsel %vm576_vm0, %v699_v8, 0 }
 0x166   : > { %718 = vmatpush.bf16.msra.mxu2 %v709_v9 }
 0x168   : > { %v556_v11 = vpop.f32.mrf.mxu1 }
 0x169   : > { %v557_v12 = vadd.f32 %v1559_v49, %v556_v11  ;;  %1368 = vmatmul.msk.bf16.vlgmr.msra.gmra.mxu2 %vm572_vm1, %v1411_v10 }
 0x16b   : > { %v732_v13 = vpack.c.bf16 %v557_v12, %v557_v12 }
 0x16d   : > { %v742_v14 = vsel %vm576_vm0, %v732_v13, 0 }
 0x16e   : > { %751 = vmatpush.bf16.msra.mxu3 %v742_v14 }
 0x170   : > { %v559_v16 = vpop.f32.mrf.mxu1 }
 0x171   : > { %v560_v17 = vadd.f32 %v1559_v49, %v559_v16  ;;  %1373 = vmatmul.msk.bf16.vlgmr.msra.gmra.mxu3 %vm572_vm1, %v1412_v15 }
 0x173   : > { %v765_v18 = vpack.c.bf16 %v560_v17, %v560_v17 }
 0x175   : > { %v775_v19 = vsel %vm576_vm0, %v765_v18, 0 }
 0x176   : > { %784 = vmatpush.bf16.msrb.mxu2 %v775_v19 }
 0x178   : > { %v561_v21 = vpop.f32.mrf.mxu1 }
 0x179   : > { %v562_v22 = vadd.f32 %v1559_v49, %v561_v21  ;;  %1378 = vmatmul.msk.bf16.vlgmr.msrb.gmra.mxu2 %vm572_vm1, %v1413_v20 }
 0x17b   : > { %v798_v23 = vpack.c.bf16 %v562_v22, %v562_v22 }
 0x17d   : > { %v808_v24 = vsel %vm576_vm0, %v798_v23, 0 }
 0x17e   : > { %817 = vmatpush.bf16.msrb.mxu3 %v808_v24 }
 0x181   : > { %1383 = vmatmul.msk.bf16.vlgmr.msrb.gmra.mxu3 %vm572_vm1, %v1414_v25 }
 0x1cc   : > { %v589_v26 = vpop.f32.mrf.mxu2 }
 0x1d4   : > { %v621_v27 = vpop.f32.mrf.mxu3  ;;  %v591_v28 = vpop.f32.mrf.mxu2 }
 0x1d5   : > { %v1418_v29 = vpack.c.bf16 %v591_v28, %v589_v26 }
 0x1d7   : > { %1419 = vst [vmem:[#allocation2 + $0x30] sm:$0xff] %v1418_v29  }
 0x1dc   : > { %v623_v30 = vpop.f32.mrf.mxu3  ;;  %v654_v31 = vpop.f32.mrf.mxu2 }
 0x1dd   : > { %v1423_v32 = vpack.c.bf16 %v623_v30, %v621_v27 }
 0x1df   : > { %1424 = vst [vmem:[#allocation2] sm:$0xff] %v1423_v32  }
 0x1e4   : > { %v687_v33 = vpop.f32.mrf.mxu3  ;;  %v656_v34 = vpop.f32.mrf.mxu2 }
 0x1e5   : > { %v1428_v35 = vpack.c.bf16 %v656_v34, %v654_v31 }
 0x1e7   : > { %1429 = vst [vmem:[#allocation2 + $0x18] sm:$0xff] %v1428_v35  }
 0x1ec   : > { %v689_v36 = vpop.f32.mrf.mxu3  ;;  %v720_v37 = vpop.f32.mrf.mxu2 }
 0x1ed   : > { %v1433_v38 = vpack.c.bf16 %v689_v36, %v687_v33 }
 0x1ef   : > { %1434 = vst [vmem:[#allocation2 + $0x10] sm:$0xff] %v1433_v38  }
 0x1f4   : > { %v753_v39 = vpop.f32.mrf.mxu3  ;;  %v722_v40 = vpop.f32.mrf.mxu2 }
 0x1f5   : > { %v1438_v41 = vpack.c.bf16 %v722_v40, %v720_v37 }
 0x1f7   : > { %1439 = vst [vmem:[#allocation2 + $0x8] sm:$0xff] %v1438_v41  }
 0x1fc   : > { %v755_v42 = vpop.f32.mrf.mxu3  ;;  %v786_v43 = vpop.f32.mrf.mxu2 }
 0x1fd   : > { %v1443_v44 = vpack.c.bf16 %v755_v42, %v753_v39 }
 0x1ff   : > { %1444 = vst [vmem:[#allocation2 + $0x20] sm:$0xff] %v1443_v44  }
 0x204   : > { %v819_v45 = vpop.f32.mrf.mxu3  ;;  %v788_v46 = vpop.f32.mrf.mxu2 }
 0x205   : > { %v1448_v47 = vpack.c.bf16 %v788_v46, %v786_v43 }
 0x207   : > { %1449 = vst [vmem:[#allocation2 + $0x28] sm:$0xff] %v1448_v47  }
 0x20c   : > { %v821_v48 = vpop.f32.mrf.mxu3 }
 0x20d   : > { %v1453_v49 = vpack.c.bf16 %v821_v48, %v819_v45 }
 0x20f   : > { %1454 = vst [vmem:[#allocation2 + $0x38] sm:$0xff] %v1453_v49  }
 0x210 PF: > { %v829_v50 = vld [vmem:[%s1708_s13] sm:$0xf]  ;;  %v1622_v51 = vmov 0   ;;  %v1623_v54 = vmov 1   ;;  %v1624_v60 = vmov 2   ;;  %v1625_v61 = vmov 3  }
 0x211   : > { %1560 = vset.pattern.permute.xlu0 %v1622_v51  ;;  %v838_v52 = vperm.slane %v829_v50, 0  ;;  %1561 = vset.pattern.permute.xlu1 %v1622_v51  ;;  %v832_v53 = vrot.slane %v829_v50, 2  ;;  %v831_v56 = vrot.slane %v829_v50, 1  ;;  %v833_v57 = vrot.slane %v829_v50, 3  ;;  %v1460_v4 = vld [vmem:[#allocation2] sm:$0xff]   ;;  %v1456_v6 = vld [vmem:[#allocation2 + $0x30] sm:$0xff]  }
 0x212   : > { %1562 = vset.pattern.permute.xlu2 %v1623_v54  ;;  %v1626_v62 = vmov 4   ;;  %v1627_v63 = vmov 5   ;;  %v1628_v0 = vmov 6   ;;  %v1629_v1 = vmov 7   ;;  %v1464_v7 = vld [vmem:[#allocation2 + $0x18] sm:$0xff]   ;;  %v1468_v34 = vld [vmem:[#allocation2 + $0x10] sm:$0xff]  }
 0x213   : > { %843 = vperm.xlu0 %1560, %v838_v52   ;;  %v840_v55 = vperm.slane %v832_v53, 0  ;;  %880 = vperm.xlu2 %1562, %v838_v52   ;;  %v839_v58 = vperm.slane %v831_v56, 0  ;;  %v841_v59 = vperm.slane %v833_v57, 0  ;;  %v1820_v8 = vunpack.c.l.bf16 %v1460_v4 }
 0x214   : > { %v1822_v9 = vunpack.c.h.bf16 %v1460_v4  ;;  %v1824_v10 = vunpack.c.l.bf16 %v1456_v6  ;;  %v1826_v11 = vunpack.c.h.bf16 %v1456_v6  ;;  %v1828_v12 = vunpack.c.l.bf16 %v1464_v7  ;;  %v1472_v4 = vld [vmem:[#allocation2 + $0x8] sm:$0xff]  }
 0x215   : > { %851 = vperm.xlu1 %1561, %v840_v55   ;;  %v1830_v13 = vunpack.c.h.bf16 %v1464_v7  ;;  %v1852_v37 = vunpack.c.l.bf16 %v1468_v34  ;;  %v1854_v38 = vunpack.c.h.bf16 %v1468_v34 }
 0x21b   : > { %847 = vperm.xlu0 %1560, %v839_v58   ;;  %884 = vperm.xlu2 %1562, %v839_v58  }
 0x21d   : > { %855 = vperm.xlu1 %1561, %v841_v59  }
 0x223   : > { %1563 = vset.pattern.permute.xlu0 %v1623_v54  ;;  %1565 = vset.pattern.permute.xlu2 %v1624_v60 }
 0x224   : > { %888 = vperm.xlu0 %1563, %v840_v55   ;;  %917 = vperm.xlu2 %1565, %v838_v52  }
 0x225   : > { %1564 = vset.pattern.permute.xlu1 %v1623_v54 }
 0x226   : > { %892 = vperm.xlu1 %1564, %v841_v59  }
 0x22c   : > { %1567 = vset.pattern.permute.xlu0 %v1624_v60  ;;  %925 = vperm.xlu2 %1565, %v840_v55  }
 0x22d   : > { %929 = vperm.xlu0 %1567, %v841_v59  }
 0x22e   : > { %1566 = vset.pattern.permute.xlu1 %v1624_v60 }
 0x22f   : > { %921 = vperm.xlu1 %1566, %v839_v58  }
 0x234   : > { %1569 = vset.pattern.permute.xlu2 %v1625_v61 }
 0x235   : > { %1570 = vset.pattern.permute.xlu0 %v1626_v62  ;;  %958 = vperm.xlu2 %1569, %v839_v58  }
 0x236   : > { %991 = vperm.xlu0 %1570, %v838_v52  }
 0x237   : > { %1568 = vset.pattern.permute.xlu1 %v1625_v61 }
 0x238   : > { %954 = vperm.xlu1 %1568, %v838_v52  }
 0x23d   : > { %966 = vperm.xlu2 %1569, %v841_v59  }
 0x23e   : > { %1574 = vset.pattern.permute.xlu0 %v1627_v63 }
 0x23f   : > { %1032 = vperm.xlu0 %1574, %v839_v58  }
 0x240   : > { %962 = vperm.xlu1 %1568, %v840_v55  }
 0x245   : > { %1572 = vset.pattern.permute.xlu2 %v1626_v62 }
 0x246   : > { %999 = vperm.xlu2 %1572, %v840_v55  }
 0x247   : > { %1578 = vset.pattern.permute.xlu0 %v1628_v0 }
 0x248   : > { %1571 = vset.pattern.permute.xlu1 %v1626_v62  ;;  %1073 = vperm.xlu0 %1578, %v840_v55  }
 0x249   : > { %995 = vperm.xlu1 %1571, %v839_v58  }
 0x24e   : > { %1573 = vset.pattern.permute.xlu2 %v1627_v63 }
 0x24f   : > { %1028 = vperm.xlu2 %1573, %v838_v52  }
 0x250   : > { %1581 = vset.pattern.permute.xlu0 %v1629_v1 }
 0x251   : > { %1003 = vperm.xlu1 %1571, %v841_v59   ;;  %1114 = vperm.xlu0 %1581, %v841_v59  }
 0x257   : > { %1040 = vperm.xlu2 %1573, %v841_v59  }
 0x259   : > { %1575 = vset.pattern.permute.xlu1 %v1627_v63 }
 0x25a   : > { %1036 = vperm.xlu1 %1575, %v840_v55  }
 0x25f   : > { %1577 = vset.pattern.permute.xlu2 %v1628_v0 }
 0x260   : > { %1069 = vperm.xlu2 %1577, %v839_v58  }
 0x262   : > { %1576 = vset.pattern.permute.xlu1 %v1628_v0 }
 0x263   : > { %1065 = vperm.xlu1 %1576, %v838_v52  }
 0x268   : > { %1579 = vset.pattern.permute.xlu2 %v1629_v1 }
 0x269   : > { %1102 = vperm.xlu2 %1579, %v838_v52  }
 0x26b   : > { %1077 = vperm.xlu1 %1576, %v841_v59  }
 0x26d   : > { %v881_v2 = vpop.permute.xlu2 %880 }
 0x26e   : > { %v895_v14 = vmul.f32 %v1820_v8, %v881_v2  ;;  %v896_v15 = vmul.f32 %v1822_v9, %v881_v2 }
 0x271   : > { %1110 = vperm.xlu2 %1579, %v840_v55  }
 0x273   : > { %1580 = vset.pattern.permute.xlu1 %v1629_v1 }
 0x274   : > { %1106 = vperm.xlu1 %1580, %v839_v58  }
 0x275   : > { %v885_v3 = vpop.permute.xlu2 %884 }
 0x276   : > { %v897_v35 = vmul.f32 %v1820_v8, %v885_v3  ;;  %v898_v36 = vmul.f32 %v1822_v9, %v885_v3 }
 0x27e   : > { %v918_v5 = vpop.permute.xlu2 %917 }
 0x27f   : > { %v932_v19 = vmul.f32 %v1828_v12, %v918_v5  ;;  %v933_v20 = vmul.f32 %v1830_v13, %v918_v5 }
 0x285   : > { %v844_v16 = vpop.permute.xlu0 %843 }
 0x286   : > { %v858_v17 = vmul.f32 %v1824_v10, %v844_v16  ;;  %v859_v18 = vmul.f32 %v1826_v11, %v844_v16  ;;  %v926_v21 = vpop.permute.xlu2 %925  ;;  %v1886_v16 = vunpack.c.l.bf16 %v1472_v4 }
 0x287   : > { %v852_v22 = vpop.permute.xlu1 %851  ;;  %v936_v0 = vmul.f32 %v1828_v12, %v926_v21  ;;  %v937_v1 = vmul.f32 %v1830_v13, %v926_v21 }
 0x288   : > { %v903_v23 = vadd.f32 %v895_v14, %v858_v17  ;;  %v904_v24 = vadd.f32 %v896_v15, %v859_v18  ;;  %v862_v62 = vmul.f32 %v1824_v10, %v852_v22  ;;  %v863_v63 = vmul.f32 %v1826_v11, %v852_v22  ;;  %v1476_v22 = vld [vmem:[#allocation2 + $0x20] sm:$0xff]  }
 0x289   : > { %v1888_v17 = vunpack.c.h.bf16 %v1472_v4  ;;  %v1894_v34 = vunpack.c.l.bf16 %v1476_v22 }
 0x28a   : > { %v1838_v25 = vadd.f32 %v932_v19, %v903_v23  ;;  %v1840_v26 = vadd.f32 %v933_v20, %v904_v24  ;;  %v1480_v23 = vld [vmem:[#allocation2 + $0x28] sm:$0xff]  }
 0x28d   : > { %v848_v31 = vpop.permute.xlu0 %847 }
 0x28e   : > { %v860_v32 = vmul.f32 %v1824_v10, %v848_v31  ;;  %v861_v33 = vmul.f32 %v1826_v11, %v848_v31 }
 0x28f   : > { %v1842_v27 = vpop.permute.xlu1 %855  ;;  %v959_v28 = vpop.permute.xlu2 %958 }
 0x290   : > { %v905_v40 = vadd.f32 %v897_v35, %v860_v32  ;;  %v906_v41 = vadd.f32 %v898_v36, %v861_v33  ;;  %v971_v43 = vmul.f32 %v1852_v37, %v959_v28  ;;  %v972_v44 = vmul.f32 %v1854_v38, %v959_v28  ;;  %v1484_v33 = vld [vmem:[#allocation2 + $0x38] sm:$0xff]  }
 0x291   : > { %v1896_v35 = vunpack.c.h.bf16 %v1476_v22  ;;  %v1898_v36 = vunpack.c.l.bf16 %v1480_v23 }
 0x296   : > { %v889_v51 = vpop.permute.xlu0 %888 }
 0x297   : > { %v1844_v29 = vpop.permute.xlu2 %966  ;;  %v899_v60 = vmul.f32 %v1820_v8, %v889_v51  ;;  %v900_v61 = vmul.f32 %v1822_v9, %v889_v51 }
 0x298   : > { %v1846_v30 = vpop.permute.xlu1 %892 }
 0x299   : > { %v907_v2 = vadd.f32 %v899_v60, %v862_v62  ;;  %v908_v3 = vadd.f32 %v900_v61, %v863_v63  ;;  %v864_v62 = vmul.f32 %v1824_v10, %v1842_v27  ;;  %v902_v63 = vmul.f32 %v1822_v9, %v1846_v30 }
 0x29b   : > { %v944_v18 = vadd.f32 %v936_v0, %v907_v2  ;;  %v945_v19 = vadd.f32 %v937_v1, %v908_v3 }
 0x29f   : > { %v930_v55 = vpop.permute.xlu0 %929 }
 0x2a0   : > { %v1000_v39 = vpop.permute.xlu2 %999  ;;  %v938_v4 = vmul.f32 %v1828_v12, %v930_v55 }
 0x2a1   : > { %v922_v42 = vpop.permute.xlu1 %921  ;;  %v1010_v20 = vmul.f32 %v1886_v16, %v1000_v39  ;;  %v1011_v21 = vmul.f32 %v1888_v17, %v1000_v39 }
 0x2a2   : > { %v934_v45 = vmul.f32 %v1828_v12, %v922_v42  ;;  %v935_v46 = vmul.f32 %v1830_v13, %v922_v42 }
 0x2a4   : > { %v942_v47 = vadd.f32 %v934_v45, %v905_v40  ;;  %v943_v48 = vadd.f32 %v935_v46, %v906_v41  ;;  %v1900_v40 = vunpack.c.h.bf16 %v1480_v23 }
 0x2a6   : > { %v1860_v49 = vadd.f32 %v971_v43, %v942_v47  ;;  %v1862_v50 = vadd.f32 %v972_v44, %v943_v48  ;;  %v1904_v43 = vunpack.c.l.bf16 %v1484_v33  ;;  %v1906_v44 = vunpack.c.h.bf16 %v1484_v33 }
 0x2a8   : > { %v992_v57 = vpop.permute.xlu0 %991 }
 0x2a9   : > { %v1864_v52 = vpop.permute.xlu2 %1028  ;;  %v1006_v39 = vmul.f32 %v1886_v16, %v992_v57  ;;  %v1007_v42 = vmul.f32 %v1888_v17, %v992_v57 }
 0x2aa   : > { %v955_v53 = vpop.permute.xlu1 %954 }
 0x2ab   : > { %v969_v24 = vmul.f32 %v1852_v37, %v955_v53  ;;  %v970_v28 = vmul.f32 %v1854_v38, %v955_v53 }
 0x2ad   : > { %v977_v45 = vadd.f32 %v969_v24, %v1838_v25  ;;  %v978_v46 = vadd.f32 %v970_v28, %v1840_v26  ;;  %v865_v25 = vmul.f32 %v1826_v11, %v1842_v27  ;;  %v901_v26 = vmul.f32 %v1820_v8, %v1846_v30 }
 0x2ae   : > { %v1043_v11 = vmul.f32 %v1894_v34, %v1864_v52  ;;  %v1044_v8 = vmul.f32 %v1896_v35, %v1864_v52 }
 0x2af   : > { %v1014_v10 = vadd.f32 %v1006_v39, %v977_v45  ;;  %v1015_v27 = vadd.f32 %v1007_v42, %v978_v46  ;;  %v909_v30 = vadd.f32 %v901_v26, %v864_v62 }
 0x2b1   : > { %v1866_v54 = vpop.permute.xlu2 %1040  ;;  %v1878_v5 = vpop.permute.xlu0 %1032  ;;  %v1051_v22 = vadd.f32 %v1043_v11, %v1014_v10  ;;  %v1052_v23 = vadd.f32 %v1044_v8, %v1015_v27 }
 0x2b2   : > { %v963_v56 = vpop.permute.xlu1 %962  ;;  %v1050_v45 = vmul.f32 %v1896_v35, %v1866_v54 }
 0x2b3   : > { %v973_v14 = vmul.f32 %v1852_v37, %v963_v56  ;;  %v974_v15 = vmul.f32 %v1854_v38, %v963_v56 }
 0x2b5   : > { %v981_v31 = vadd.f32 %v973_v14, %v944_v18  ;;  %v982_v32 = vadd.f32 %v974_v15, %v945_v19  ;;  %v939_v14 = vmul.f32 %v1830_v13, %v930_v55  ;;  %v910_v18 = vadd.f32 %v902_v63, %v865_v25 }
 0x2b6   : > { %v975_v19 = vmul.f32 %v1852_v37, %v1844_v29  ;;  %v976_v13 = vmul.f32 %v1854_v38, %v1844_v29  ;;  %v946_v55 = vadd.f32 %v938_v4, %v909_v30 }
 0x2b7   : > { %v1018_v48 = vadd.f32 %v1010_v20, %v981_v31  ;;  %v1019_v51 = vadd.f32 %v1011_v21, %v982_v32  ;;  %v947_v21 = vadd.f32 %v939_v14, %v910_v18 }
 0x2b8   : > { %v983_v33 = vadd.f32 %v975_v19, %v946_v55 }
 0x2ba   : > { %v1868_v58 = vpop.permute.xlu2 %1069  ;;  %v1074_v41 = vpop.permute.xlu0 %1073 }
 0x2bb   : > { %v1870_v59 = vpop.permute.xlu1 %995  ;;  %v1084_v61 = vmul.f32 %v1898_v36, %v1074_v41  ;;  %v1085_v57 = vmul.f32 %v1900_v40, %v1074_v41  ;;  %v984_v41 = vadd.f32 %v976_v13, %v947_v21  ;;  %v1082_v11 = vmul.f32 %v1898_v36, %v1868_v58 }
 0x2c3   : > { %v1880_v6 = vpop.permute.xlu1 %1003  ;;  %v1882_v7 = vpop.permute.xlu2 %1102 }
 0x2c4   : > { %v1012_v52 = vmul.f32 %v1886_v16, %v1880_v6  ;;  %v1013_v24 = vmul.f32 %v1888_v17, %v1880_v6  ;;  %v1117_v37 = vmul.f32 %v1904_v43, %v1882_v7  ;;  %v1118_v32 = vmul.f32 %v1906_v44, %v1882_v7 }
 0x2c5   : > { %v1049_v6 = vmul.f32 %v1894_v34, %v1866_v54 }
 0x2c6   : > { %v1020_v46 = vadd.f32 %v1012_v52, %v983_v33 }
 0x2c8   : > { %v1057_v25 = vadd.f32 %v1049_v6, %v1020_v46 }
 0x2cb   : > { %v1111_v53 = vpop.permute.xlu2 %1110 }
 0x2cc   : > { %v1037_v47 = vpop.permute.xlu1 %1036  ;;  %v1121_v2 = vmul.f32 %v1904_v43, %v1111_v53  ;;  %v1122_v3 = vmul.f32 %v1906_v44, %v1111_v53  ;;  %v1008_v53 = vmul.f32 %v1886_v16, %v1870_v59 }
 0x2cd   : > { %v1047_v56 = vmul.f32 %v1894_v34, %v1037_v47  ;;  %v1048_v60 = vmul.f32 %v1896_v35, %v1037_v47  ;;  %v1021_v47 = vadd.f32 %v1013_v24, %v984_v41 }
 0x2cf   : > { %v1055_v0 = vadd.f32 %v1047_v56, %v1018_v48  ;;  %v1056_v1 = vadd.f32 %v1048_v60, %v1019_v51  ;;  %v1115_v51 = vpop.permute.xlu0 %1114  ;;  %v1009_v56 = vmul.f32 %v1888_v17, %v1870_v59  ;;  %v1058_v54 = vadd.f32 %v1050_v45, %v1021_v47 }
 0x2d0   : > { %v1124_v62 = vmul.f32 %v1906_v44, %v1115_v51  ;;  %v1045_v59 = vmul.f32 %v1894_v34, %v1878_v5  ;;  %v1046_v17 = vmul.f32 %v1896_v35, %v1878_v5 }
 0x2d1   : > { %v1092_v15 = vadd.f32 %v1084_v61, %v1055_v0  ;;  %v1093_v9 = vadd.f32 %v1085_v57, %v1056_v1  ;;  %v1123_v57 = vmul.f32 %v1904_v43, %v1115_v51  ;;  %v1016_v0 = vadd.f32 %v1008_v53, %v1860_v49 }
 0x2d2   : > { %v1017_v16 = vadd.f32 %v1009_v56, %v1862_v50  ;;  %v1083_v49 = vmul.f32 %v1900_v40, %v1868_v58 }
 0x2d3   : > { %v1129_v20 = vadd.f32 %v1121_v2, %v1092_v15  ;;  %v1130_v12 = vadd.f32 %v1122_v3, %v1093_v9  ;;  %v1053_v14 = vadd.f32 %v1045_v59, %v1016_v0 }
 0x2d4   : > { %v1054_v10 = vadd.f32 %v1046_v17, %v1017_v16 }
 0x2d5   : > { %v1500_v28 = vpack.c.bf16 %v1130_v12, %v1129_v20  ;;  %v1066_v31 = vpop.permute.xlu1 %1065  ;;  %v1090_v34 = vadd.f32 %v1082_v11, %v1053_v14 }
 0x2d6   : > { %v1080_v29 = vmul.f32 %v1898_v36, %v1066_v31  ;;  %v1081_v38 = vmul.f32 %v1900_v40, %v1066_v31  ;;  %v1091_v8 = vadd.f32 %v1083_v49, %v1054_v10 }
 0x2d7   : > { %1508 = vst [vmem:[%s1718_s23 + $0x10] sm:$0xff] %v1500_v28  }
 0x2d8   : > { %v1088_v39 = vadd.f32 %v1080_v29, %v1051_v22  ;;  %v1089_v42 = vadd.f32 %v1081_v38, %v1052_v23 }
 0x2da   : > { %v1125_v48 = vadd.f32 %v1117_v37, %v1088_v39  ;;  %v1126_v7 = vadd.f32 %v1118_v32, %v1089_v42 }
 0x2dc   : > { %v1490_v60 = vpack.c.bf16 %v1126_v7, %v1125_v48 }
 0x2dd   : > { %v1078_v61 = vpop.permute.xlu1 %1077 }
 0x2de   : > { %1491 = vst [vmem:[%s1718_s23] sm:$0xff] %v1490_v60   ;;  %v1086_v26 = vmul.f32 %v1898_v36, %v1078_v61  ;;  %v1087_v63 = vmul.f32 %v1900_v40, %v1078_v61 }
 0x2e0   : > { %v1094_v1 = vadd.f32 %v1086_v26, %v1057_v25  ;;  %v1095_v2 = vadd.f32 %v1087_v63, %v1058_v54 }
 0x2e2   : > { %v1131_v3 = vadd.f32 %v1123_v57, %v1094_v1  ;;  %v1132_v4 = vadd.f32 %v1124_v62, %v1095_v2 }
 0x2e4   : > { %v1505_v50 = vpack.c.bf16 %v1132_v4, %v1131_v3 }
 0x2e6   : > { %1509 = vst [vmem:[%s1718_s23 + $0x18] sm:$0xff] %v1505_v50   ;;  %v1107_v27 = vpop.permute.xlu1 %1106 }
 0x2e7   : > { %v1119_v5 = vmul.f32 %v1904_v43, %v1107_v27  ;;  %v1120_v35 = vmul.f32 %v1906_v44, %v1107_v27 }
 0x2e9   : > { %v1127_v15 = vadd.f32 %v1119_v5, %v1090_v34  ;;  %v1128_v9 = vadd.f32 %v1120_v35, %v1091_v8 }
 0x2eb   : > { %v1495_v30 = vpack.c.bf16 %v1128_v9, %v1127_v15 }
 0x2ed   : > { %1507 = vst [vmem:[%s1718_s23 + $0x8] sm:$0xff] %v1495_v30  }
 0x2ee PF: > { %s17_s28 = sadd.s32 1, %s1620_s28   ;;  %s1995_s24 = smov %s1612_s26 }
 0x2ef   : > { %p14_p9 = scmp.ge.s32.totalorder %s17_s28, 10   ;;  %s1996_s25 = smov %s1616_s27 }
 0x2f0   : > { %s1997_s26 = smov %s2000_s29  ;;  %s1998_s27 = smov %s2004_s30 }
 0x2f1   :  { %16 = sbr.rel (!%p14_p9) target bundleno = 3 (0x3), region = 99 }

</bundles_post_ra>
